<compile_context>
chip_gen: v6e
topology: v6e:2x2x1
jax: 0.10.0
libtpu: 0.0.40
codegen_flags: <defaults>
</compile_context>

<pallas_src>
import functools
import math

import jax
import jax.numpy as jnp
from jax.experimental import pallas as pl
from jax.experimental.pallas import tpu as pltpu


def _round_up(n, m):
    return -(-n // m) * m


def _mlp_softmax_kernel(x_ref, w_ref, b_ref, o_ref, *, num_layers, out_dim,
                        approx_softmax):
    """One grid step processes a (TM, P) tile of (zero-padded) states.

    x_ref: (TM, P)   f32  zero-padded activations
    w_ref: (L, P, P) f32  packed, zero-padded (in, out) weights (VMEM-resident)
    b_ref: (L, 1, P) f32  packed, zero-padded biases           (VMEM-resident)
    o_ref: (TM, P)   f32  softmax probabilities (padded lanes written as 0)
    """
    h = x_ref[...]
    for l in range(num_layers):                       # static unroll (5 layers)
        z = jnp.dot(h, w_ref[l], preferred_element_type=jnp.float32)  # MXU
        h = z + b_ref[l]                               # f32 bias add (VPU)
        if l < num_layers - 1:
            h = jnp.maximum(h, 0.0)                    # f32 ReLU (VPU)

    # Mask padded lanes with -inf (robust even if padded weight columns were
    # ever nonzero) and keep the softmax + store at the full P-lane width:
    # avoids the sub-vreg relayout of an 8-of-32 slice and the masked
    # `vst.msk` partial-store path (worst on v5e's single vst slot).
    lane = jax.lax.broadcasted_iota(jnp.int32, h.shape, dimension=1)
    logits = jnp.where(lane < out_dim, h, -jnp.inf)
    m = jnp.max(logits, axis=-1, keepdims=True)
    e = jnp.exp(logits - m)                            # padded lanes -> 0
    denom = jnp.sum(e, axis=-1, keepdims=True)
    if approx_softmax:
        p = e * pl.reciprocal(denom, approx=True)      # EUP slot (~1e-3 norm err)
    else:
        p = e / denom                                  # exact normalization
    o_ref[...] = p.astype(o_ref.dtype)
    # TODO(synk): optionally fuse Gumbel-max action sampling (pltpu.prng_seed /
    # prng_random_bits) into this epilogue for rollouts to shrink output traffic.


def pack_policy_params(params):
    """Pack the (W, b) pairs into 2 zero-padded slabs (host-side, once)."""
    dims = [params[0][0].shape[0]] + [w.shape[1] for w, _ in params]
    num_layers = len(params)
    pad = _round_up(max(dims), 8)                      # sublane-friendly pad
    w_all = jnp.zeros((num_layers, pad, pad), jnp.float32)
    b_all = jnp.zeros((num_layers, 1, pad), jnp.float32)
    for l, (w, b) in enumerate(params):
        w_all = w_all.at[l, :w.shape[0], :w.shape[1]].set(w)
        b_all = b_all.at[l, 0, :b.shape[0]].set(b)
    return w_all, b_all, pad, dims[-1]


def _pick_tile(batch, block_batch):
    """Batch tile: large (default 4096 rows) to amortize the ~0.35 us/step
    overhead, but capped at ~half the padded batch so the grid has >= 2 steps
    whenever possible (v7x megacore sharding via ("parallel",))."""
    rows = _round_up(batch, 8)
    tm = min(block_batch, rows)
    if rows >= 16:
        tm = min(tm, _round_up(-(-rows // 2), 8))
    return max(tm, 8)


def _policy_forward_packed(x, w_all, b_all, *, num_layers, pad, out_dim,
                           block_batch, approx_softmax):
    batch, input_dim = x.shape
    tm = _pick_tile(batch, block_batch)
    batch_pad = _round_up(batch, tm)

    if batch_pad != batch or pad != input_dim:
        # Pad only what is needed (single jnp.pad; skipped entirely when the
        # batch tiles evenly and input_dim already equals the padded width).
        x = jnp.pad(x, ((0, batch_pad - batch), (0, pad - input_dim)))

    w_bytes = w_all.size * w_all.dtype.itemsize
    b_bytes = b_all.size * b_all.dtype.itemsize

    # Advisory cost estimate so XLA schedules the custom call sensibly
    # relative to surrounding rollout ops.
    cost = pl.CostEstimate(
        flops=int(2 * batch_pad * num_layers * pad * pad + 6 * batch_pad * pad),
        transcendentals=int(batch_pad * pad),
        bytes_accessed=int(2 * batch_pad * pad * 4 + w_bytes + b_bytes))

    # Explicit VMEM budget: double-buffered input + output tiles, resident
    # weight/bias slabs, and activation-temporary headroom.  Matters on v5e
    # (16 MiB default scoped VMEM) once tm grows into the thousands; capped
    # well under v7x's 64 MiB physical VMEM.
    tile_bytes = tm * pad * 4
    vmem_needed = 12 * tile_bytes + w_bytes + b_bytes
    vmem_limit = int(min(max(vmem_needed, 16 << 20), 60 << 20))

    kernel = functools.partial(_mlp_softmax_kernel, num_layers=num_layers,
                               out_dim=out_dim, approx_softmax=approx_softmax)
    out = pl.pallas_call(
        kernel,
        out_shape=jax.ShapeDtypeStruct((batch_pad, pad), jnp.float32),
        grid=(batch_pad // tm,),
        in_specs=[
            pl.BlockSpec((tm, pad), lambda i: (i, 0)),
            # Constant index_maps -> slabs stay VMEM-resident across the grid.
            pl.BlockSpec((num_layers, pad, pad), lambda i: (0, 0, 0)),
            pl.BlockSpec((num_layers, 1, pad), lambda i: (0, 0, 0)),
        ],
        out_specs=pl.BlockSpec((tm, pad), lambda i: (i, 0)),
        compiler_params=pltpu.CompilerParams(
            dimension_semantics=("parallel",),         # megacore-shard batch
            vmem_limit_bytes=vmem_limit),
        cost_estimate=cost,
    )(x, w_all, b_all)
    return out[:batch, :out_dim]


def make_policy_forward(params, *, block_batch=4096, approx_softmax=False):
    """Pack parameters once and return a jitted `forward(x)` callable."""
    w_all, b_all, pad, out_dim = pack_policy_params(params)
    num_layers = len(params)
    fwd = jax.jit(functools.partial(
        _policy_forward_packed, num_layers=num_layers, pad=pad,
        out_dim=out_dim, block_batch=block_batch,
        approx_softmax=approx_softmax))
    return lambda x: fwd(x, w_all, b_all)


def policy_network_forward(x, params, *, block_batch=4096,
                           approx_softmax=False):
    """One-shot convenience wrapper (packs params on every call)."""
    return make_policy_forward(params, block_batch=block_batch,
                               approx_softmax=approx_softmax)(x)


def init_policy_network_params(key, input_dim, output_dim):
    """PyTorch-style init; layer sizes exactly as in PolicyNetwork.
    Weights are returned pre-transposed to (in_features, out_features)."""
    s = input_dim + output_dim
    dims = [input_dim, s * 4 // 5, s * 3 // 5, s * 2 // 5, s // 5, output_dim]
    params = []
    for i in range(5):
        fan_in, fan_out = dims[i], dims[i + 1]
        key, kw, kb = jax.random.split(key, 3)
        bound = 1.0 / math.sqrt(fan_in)
        w = jax.random.uniform(kw, (fan_in, fan_out), jnp.float32,
                               minval=-bound, maxval=bound)
        b = jax.random.uniform(kb, (fan_out,), jnp.float32,
                               minval=-bound, maxval=bound)
        params.append((w, b))
    return params


def policy_network_ref(x, params):
    """Pure-JAX reference of the PyTorch forward pass."""
    h = x
    n = len(params)
    for i, (w, b) in enumerate(params):
        h = jnp.dot(h, w, preferred_element_type=jnp.float32) + b
        if i < n - 1:
            h = jnp.maximum(h, 0.0)
    return jax.nn.softmax(h, axis=-1)


if __name__ == "__main__":
    INPUT_DIM = 32
    OUTPUT_DIM = 8
    BATCH = 2

    key = jax.random.PRNGKey(0)
    key_x, key_p, key_xl = jax.random.split(key, 3)

    x = jax.random.normal(key_x, (BATCH, INPUT_DIM), dtype=jnp.float32)
    params = init_policy_network_params(key_p, INPUT_DIM, OUTPUT_DIM)

    forward = make_policy_forward(params)        # packs + jits once

    # 1) Tiny batch (single 8-row tile): must reproduce PyTorch semantics.
    ref = policy_network_ref(x, params)
    out = jax.block_until_ready(forward(x))
    assert out.shape == (BATCH, OUTPUT_DIM)
    assert jnp.allclose(jnp.sum(out, axis=-1), 1.0, atol=1e-5)
    assert jnp.allclose(out, ref, atol=1e-5, rtol=1e-5)

    # 2) Rollout-sized batch: >= 2 grid steps (megacore-shardable on v7x),
    #    weights/biases stay VMEM-resident across all steps.
    x_large = jax.random.normal(key_xl, (1024, INPUT_DIM), dtype=jnp.float32)
    ref_large = policy_network_ref(x_large, params)
    out_large = jax.block_until_ready(forward(x_large))
    assert out_large.shape == (1024, OUTPUT_DIM)
    assert jnp.allclose(jnp.sum(out_large, axis=-1), 1.0, atol=1e-5)
    assert jnp.allclose(out_large, ref_large, atol=1e-4, rtol=1e-4)

    print("KERNEL_OK")
</pallas_src>

<mosaic_0001>
module attributes {stable_mosaic.version = 11 : i64} {
  func.func @_mlp_softmax_kernel(%arg0: i32, %arg1: memref<8x32xf32, #tpu.memory_space<vmem>>, %arg2: memref<5x32x32xf32, #tpu.memory_space<vmem>>, %arg3: memref<5x1x32xf32, #tpu.memory_space<vmem>>, %arg4: memref<8x32xf32, #tpu.memory_space<vmem>>) attributes {dimension_semantics = [#tpu.dimension_semantics<parallel>], iteration_bounds = array<i64: 1>, scalar_prefetch = 0 : i64, scratch_operands = 0 : i64, tpu.core_type = #tpu.core_type<tc>, window_params = [{transform_indices = @transform_0, window_bounds = array<i64: 8, 32>}, {pipeline_mode = #tpu.pipeline_mode<synchronous>, transform_indices = @transform_1, window_bounds = array<i64: 5, 32, 32>}, {pipeline_mode = #tpu.pipeline_mode<synchronous>, transform_indices = @transform_2, window_bounds = array<i64: 5, 1, 32>}, {transform_indices = @transform_3, window_bounds = array<i64: 8, 32>}]} {
    %c0 = arith.constant 0 : index
    %c0_0 = arith.constant 0 : index
    %0 = vector.load %arg1[%c0, %c0_0] : memref<8x32xf32, #tpu.memory_space<vmem>>, vector<8x32xf32>
    %c0_1 = arith.constant 0 : index
    %c0_2 = arith.constant 0 : index
    %c0_3 = arith.constant 0 : index
    %1 = vector.load %arg2[%c0_1, %c0_2, %c0_3] : memref<5x32x32xf32, #tpu.memory_space<vmem>>, vector<1x32x32xf32>
    %2 = vector.shape_cast %1 : vector<1x32x32xf32> to vector<32x32xf32>
    %cst = arith.constant dense<0.000000e+00> : vector<8x32xf32>
    %3 = tpu.matmul %0, %2, %cst {dimension_numbers = #tpu.dot_dimension_numbers<[1], [0], [0], [1], [0, 0, 1, 1], [], []>} : vector<8x32xf32>, vector<32x32xf32>, vector<8x32xf32> -> vector<8x32xf32>
    %c0_4 = arith.constant 0 : index
    %c0_5 = arith.constant 0 : index
    %c0_6 = arith.constant 0 : index
    %4 = vector.load %arg3[%c0_4, %c0_5, %c0_6] : memref<5x1x32xf32, #tpu.memory_space<vmem>>, vector<1x1x32xf32>
    %5 = vector.shape_cast %4 : vector<1x1x32xf32> to vector<1x32xf32>
    %6 = vector.broadcast %5 : vector<1x32xf32> to vector<8x32xf32>
    %7 = arith.addf %3, %6 : vector<8x32xf32>
    %cst_7 = arith.constant 0.000000e+00 : f32
    %8 = vector.broadcast %cst_7 : f32 to vector<8x32xf32>
    %9 = arith.maximumf %7, %8 : vector<8x32xf32>
    %c1 = arith.constant 1 : index
    %c0_8 = arith.constant 0 : index
    %c0_9 = arith.constant 0 : index
    %10 = vector.load %arg2[%c1, %c0_8, %c0_9] : memref<5x32x32xf32, #tpu.memory_space<vmem>>, vector<1x32x32xf32>
    %11 = vector.shape_cast %10 : vector<1x32x32xf32> to vector<32x32xf32>
    %cst_10 = arith.constant dense<0.000000e+00> : vector<8x32xf32>
    %12 = tpu.matmul %9, %11, %cst_10 {dimension_numbers = #tpu.dot_dimension_numbers<[1], [0], [0], [1], [0, 0, 1, 1], [], []>} : vector<8x32xf32>, vector<32x32xf32>, vector<8x32xf32> -> vector<8x32xf32>
    %c1_11 = arith.constant 1 : index
    %c0_12 = arith.constant 0 : index
    %c0_13 = arith.constant 0 : index
    %13 = vector.load %arg3[%c1_11, %c0_12, %c0_13] : memref<5x1x32xf32, #tpu.memory_space<vmem>>, vector<1x1x32xf32>
    %14 = vector.shape_cast %13 : vector<1x1x32xf32> to vector<1x32xf32>
    %15 = vector.broadcast %14 : vector<1x32xf32> to vector<8x32xf32>
    %16 = arith.addf %12, %15 : vector<8x32xf32>
    %cst_14 = arith.constant 0.000000e+00 : f32
    %17 = vector.broadcast %cst_14 : f32 to vector<8x32xf32>
    %18 = arith.maximumf %16, %17 : vector<8x32xf32>
    %c2 = arith.constant 2 : index
    %c0_15 = arith.constant 0 : index
    %c0_16 = arith.constant 0 : index
    %19 = vector.load %arg2[%c2, %c0_15, %c0_16] : memref<5x32x32xf32, #tpu.memory_space<vmem>>, vector<1x32x32xf32>
    %20 = vector.shape_cast %19 : vector<1x32x32xf32> to vector<32x32xf32>
    %cst_17 = arith.constant dense<0.000000e+00> : vector<8x32xf32>
    %21 = tpu.matmul %18, %20, %cst_17 {dimension_numbers = #tpu.dot_dimension_numbers<[1], [0], [0], [1], [0, 0, 1, 1], [], []>} : vector<8x32xf32>, vector<32x32xf32>, vector<8x32xf32> -> vector<8x32xf32>
    %c2_18 = arith.constant 2 : index
    %c0_19 = arith.constant 0 : index
    %c0_20 = arith.constant 0 : index
    %22 = vector.load %arg3[%c2_18, %c0_19, %c0_20] : memref<5x1x32xf32, #tpu.memory_space<vmem>>, vector<1x1x32xf32>
    %23 = vector.shape_cast %22 : vector<1x1x32xf32> to vector<1x32xf32>
    %24 = vector.broadcast %23 : vector<1x32xf32> to vector<8x32xf32>
    %25 = arith.addf %21, %24 : vector<8x32xf32>
    %cst_21 = arith.constant 0.000000e+00 : f32
    %26 = vector.broadcast %cst_21 : f32 to vector<8x32xf32>
    %27 = arith.maximumf %25, %26 : vector<8x32xf32>
    %c3 = arith.constant 3 : index
    %c0_22 = arith.constant 0 : index
    %c0_23 = arith.constant 0 : index
    %28 = vector.load %arg2[%c3, %c0_22, %c0_23] : memref<5x32x32xf32, #tpu.memory_space<vmem>>, vector<1x32x32xf32>
    %29 = vector.shape_cast %28 : vector<1x32x32xf32> to vector<32x32xf32>
    %cst_24 = arith.constant dense<0.000000e+00> : vector<8x32xf32>
    %30 = tpu.matmul %27, %29, %cst_24 {dimension_numbers = #tpu.dot_dimension_numbers<[1], [0], [0], [1], [0, 0, 1, 1], [], []>} : vector<8x32xf32>, vector<32x32xf32>, vector<8x32xf32> -> vector<8x32xf32>
    %c3_25 = arith.constant 3 : index
    %c0_26 = arith.constant 0 : index
    %c0_27 = arith.constant 0 : index
    %31 = vector.load %arg3[%c3_25, %c0_26, %c0_27] : memref<5x1x32xf32, #tpu.memory_space<vmem>>, vector<1x1x32xf32>
    %32 = vector.shape_cast %31 : vector<1x1x32xf32> to vector<1x32xf32>
    %33 = vector.broadcast %32 : vector<1x32xf32> to vector<8x32xf32>
    %34 = arith.addf %30, %33 : vector<8x32xf32>
    %cst_28 = arith.constant 0.000000e+00 : f32
    %35 = vector.broadcast %cst_28 : f32 to vector<8x32xf32>
    %36 = arith.maximumf %34, %35 : vector<8x32xf32>
    %c4 = arith.constant 4 : index
    %c0_29 = arith.constant 0 : index
    %c0_30 = arith.constant 0 : index
    %37 = vector.load %arg2[%c4, %c0_29, %c0_30] : memref<5x32x32xf32, #tpu.memory_space<vmem>>, vector<1x32x32xf32>
    %38 = vector.shape_cast %37 : vector<1x32x32xf32> to vector<32x32xf32>
    %cst_31 = arith.constant dense<0.000000e+00> : vector<8x32xf32>
    %39 = tpu.matmul %36, %38, %cst_31 {dimension_numbers = #tpu.dot_dimension_numbers<[1], [0], [0], [1], [0, 0, 1, 1], [], []>} : vector<8x32xf32>, vector<32x32xf32>, vector<8x32xf32> -> vector<8x32xf32>
    %c4_32 = arith.constant 4 : index
    %c0_33 = arith.constant 0 : index
    %c0_34 = arith.constant 0 : index
    %40 = vector.load %arg3[%c4_32, %c0_33, %c0_34] : memref<5x1x32xf32, #tpu.memory_space<vmem>>, vector<1x1x32xf32>
    %41 = vector.shape_cast %40 : vector<1x1x32xf32> to vector<1x32xf32>
    %42 = vector.broadcast %41 : vector<1x32xf32> to vector<8x32xf32>
    %43 = arith.addf %39, %42 : vector<8x32xf32>
    %44 = tpu.iota {dimensions = array<i32: 1>} : vector<8x32xi32>
    %c8_i32 = arith.constant 8 : i32
    %45 = vector.broadcast %c8_i32 : i32 to vector<8x32xi32>
    %46 = arith.cmpi slt, %44, %45 : vector<8x32xi32>
    %cst_35 = arith.constant 0xFF800000 : f32
    %47 = vector.broadcast %cst_35 : f32 to vector<8x32xf32>
    %48 = arith.select %46, %43, %47 : vector<8x32xi1>, vector<8x32xf32>
    %cst_36 = arith.constant dense<0xFF800000> : vector<8xf32>
    %49 = vector.multi_reduction <maximumf>, %48, %cst_36 [1] : vector<8x32xf32> to vector<8xf32>
    %50 = vector.shape_cast %49 : vector<8xf32> to vector<8x1xf32>
    %51 = vector.broadcast %50 : vector<8x1xf32> to vector<8x32xf32>
    %52 = arith.subf %48, %51 : vector<8x32xf32>
    %53 = math.exp %52 : vector<8x32xf32>
    %cst_37 = arith.constant dense<0.000000e+00> : vector<8xf32>
    %54 = vector.multi_reduction <add>, %53, %cst_37 [1] : vector<8x32xf32> to vector<8xf32>
    %55 = vector.shape_cast %54 : vector<8xf32> to vector<8x1xf32>
    %56 = vector.broadcast %55 : vector<8x1xf32> to vector<8x32xf32>
    %57 = arith.divf %53, %56 : vector<8x32xf32>
    %c0_38 = arith.constant 0 : index
    %c0_39 = arith.constant 0 : index
    %58 = vector.load %arg4[%c0_38, %c0_39] : memref<8x32xf32, #tpu.memory_space<vmem>>, vector<8x32xf32>
    tpu.vector_store %arg4[%c0_38, %c0_39], %57 {strides = array<i32>} : memref<8x32xf32, #tpu.memory_space<vmem>>, vector<8x32xf32>,
    return
  }
  func.func @transform_0(%arg0: i32) -> (i32, i32) {
    %c0_i32 = arith.constant 0 : i32
    %c0_i32_0 = arith.constant 0 : i32
    return %arg0, %c0_i32 : i32, i32
  }
  func.func @transform_1(%arg0: i32) -> (i32, i32, i32) {
    %c0_i32 = arith.constant 0 : i32
    %c0_i32_0 = arith.constant 0 : i32
    %c0_i32_1 = arith.constant 0 : i32
    %c0_i32_2 = arith.constant 0 : i32
    return %c0_i32, %c0_i32_0, %c0_i32_1 : i32, i32, i32
  }
  func.func @transform_2(%arg0: i32) -> (i32, i32, i32) {
    %c0_i32 = arith.constant 0 : i32
    %c0_i32_0 = arith.constant 0 : i32
    %c0_i32_1 = arith.constant 0 : i32
    %c0_i32_2 = arith.constant 0 : i32
    return %c0_i32, %c0_i32_0, %c0_i32_1 : i32, i32, i32
  }
  func.func @transform_3(%arg0: i32) -> (i32, i32) {
    %c0_i32 = arith.constant 0 : i32
    %c0_i32_0 = arith.constant 0 : i32
    return %arg0, %c0_i32 : i32, i32
  }
}

</mosaic_0001>

<bundles_post_ra>
// kernel: _policy_forward_packed.1
= control target key start
LH: loop header
LB: loop body
LE: loop exit
PB: predicated region body
PF: predicated region fallthrough
CT: control target
= control target key end

     0   :  { %8 = vsyncpa [#allocation3], 0  ;;  %s608_s12 = smov [#allocation2]   ;;  %s695_s0 = inlined_call_operand.vmem [shape: f32[8,32], index: 0, kind: input, shape index: {}]   ;;  %s696_s1 = inlined_call_operand.hbm [shape: f32[5,32,32], index: 1, kind: input, shape index: {}]   ;;  %s697_s2 = inlined_call_operand.vmem [shape: f32[5,1,32], index: 2, kind: input, shape index: {}]   ;;  %s698_s3 = inlined_call_operand.vmem [shape: f32[8,32], index: 3, kind: output, shape index: {}]  }
   0x1   :  { %s16_s13 = sshll.u32 %s608_s12, 4  ;;  %s17_s13 = int_to_ptr.vmem [resolvable:$true] %s16_s13 }
   0x2   :  { %s594_s14 = scalar_lea.vmem %s17_s13, 2560  ;;  %p599_p1 = scmp.lt.s32.totalorder %s17_s13, %s17_s13 }
   0x3   :  { %p595_p0 = scmp.ne.s32.totalorder %s17_s13, %s594_s14  ;;  %p600_p2 = scmp.lt.s32.totalorder %s594_s14, %s594_s14 }
   0x5   :  { %p601_p3 = por %p600_p2, %p599_p1 }
   0x7   :  { %p602_p4 = pnand %p601_p3, %p595_p0 }
   0x9   :  { %605 = shalt.err (!%p602_p4)
}
   0xa   :  { %s609_s15 = smov 128   ;;  %s610_s16 = smov 8  }
   0xb   :  { %22 = dma.hbm_to_vmem [thread:$0]  %s696_s1, 2560, %s17_s13, [#allocation3], %s609_s15, %s609_s15, %s610_s16  }
   0xc   :  { %606 = dma.done.wait [#allocation3], 2560  }
   0xd   :  { %607 = vsyncadd [#allocation3], 4294964736  ;;  %v611_v0 = vmov 0.0   ;;  %vm612_vm0 = vmmov 0   ;;  %v32_v1 = vld [vmem:[#allocation2 + $0x18] sm:$0xff]  ;;  %v31_v2 = vld [vmem:[#allocation2 + $0x10] sm:$0xff]  ;;  %v462_v42 = vlaneseq }
   0xe   :  { %522 = vmatprep.subr.mxu0 %v611_v0  ;;  %530 = vmatprep.mubr.msk.f32.mxu0 %vm612_vm0, %v611_v0  ;;  %v119_v3 = vld [vmem:[#allocation2 + $0x38] sm:$0xff]  ;;  %v30_v4 = vld [vmem:[#allocation2 + $0x8] sm:$0xff]  ;;  %v29_v5 = vld [vmem:[#allocation2] sm:$0xff]  ;;  %vm40_vm1 = vcmask 261120  }
   0xf   :  { %533 = vmatprep.subr.mxu1 %v611_v0  ;;  %541 = vmatprep.mubr.msk.f32.mxu1 %vm612_vm0, %v611_v0  ;;  %v28_v6 = vld [vmem:[%s695_s0] sm:$0xff]  ;;  %v118_v7 = vld [vmem:[#allocation2 + $0x30] sm:$0xff]  ;;  %v117_v8 = vld [vmem:[#allocation2 + $0x28] sm:$0xff]  ;;  %v463_v43 = vand.u32 127, %v462_v42 }
  0x10   :  { %523 = vmatpush3.msra.mxu0 %v32_v1  ;;  %534 = vmatpush3.msra.mxu1 %v119_v3  ;;  %v116_v9 = vld [vmem:[#allocation2 + $0x20] sm:$0xff]  ;;  %v206_v10 = vld [vmem:[#allocation2 + $0x58] sm:$0xff]  ;;  %v205_v16 = vld [vmem:[#allocation2 + $0x50] sm:$0xff] }
  0x11   :  { %524 = vmatprep.subr.mxu0 %v611_v0  ;;  %535 = vmatprep.subr.mxu1 %v611_v0  ;;  %v483_v11 = vld [vmem:[%s697_s2] ss:$0 sm:$0xff]  ;;  %v204_v17 = vld [vmem:[#allocation2 + $0x48] sm:$0xff]  ;;  %v293_v19 = vld [vmem:[#allocation2 + $0x78] sm:$0xff]  ;;  %vm464_vm2 = vcmp.lt.s32.totalorder %v463_v43, 8 }
  0x12   :  { %525 = vmatpush3.msra.mxu0 %v31_v2  ;;  %536 = vmatpush3.msra.mxu1 %v118_v7  ;;  %v203_v18 = vld [vmem:[#allocation2 + $0x40] sm:$0xff]  ;;  %v292_v25 = vld [vmem:[#allocation2 + $0x70] sm:$0xff]  ;;  %v291_v26 = vld [vmem:[#allocation2 + $0x68] sm:$0xff] }
  0x13   :  { %526 = vmatprep.subr.mxu0 %v611_v0  ;;  %537 = vmatprep.subr.mxu1 %v611_v0  ;;  %v486_v20 = vld [vmem:[%s697_s2 + $0x1] ss:$0 sm:$0xff]  ;;  %v380_v28 = vld [vmem:[#allocation2 + $0x98] sm:$0xff]  ;;  %v489_v29 = vld [vmem:[%s697_s2 + $0x2] ss:$0 sm:$0xff] }
  0x14   :  { %527 = vmatpush3.msra.mxu0 %v30_v4  ;;  %538 = vmatpush3.msra.mxu1 %v117_v8  ;;  %v290_v27 = vld [vmem:[#allocation2 + $0x60] sm:$0xff]  ;;  %v379_v34 = vld [vmem:[#allocation2 + $0x90] sm:$0xff]  ;;  %v378_v35 = vld [vmem:[#allocation2 + $0x88] sm:$0xff] }
  0x15   :  { %528 = vmatprep.subr.mxu0 %v611_v0  ;;  %539 = vmatprep.subr.mxu1 %v611_v0  ;;  %v377_v36 = vld [vmem:[#allocation2 + $0x80] sm:$0xff] }
  0x16   :  { %529 = vmatpush3.msra.mxu0 %v29_v5  ;;  %540 = vmatpush3.msra.mxu1 %v116_v9  ;;  %v492_v37 = vld [vmem:[%s697_s2 + $0x3] ss:$0 sm:$0xff]  ;;  %v495_v44 = vld [vmem:[%s697_s2 + $0x4] ss:$0 sm:$0xff] }
  0x17   :  { %531 = vmatmul.mubr.msk.f32.vlgmr.msra.gmra.mxu0 %vm40_vm1, %v28_v6  ;;  %544 = vmatprep.subr.mxu0 %v611_v0 }
  0x18   :  { %552 = vmatprep.mubr.msk.f32.mxu0 %vm612_vm0, %v611_v0  ;;  %555 = vmatprep.subr.mxu1 %v611_v0 }
  0x19   :  { %545 = vmatpush3.msra.mxu0 %v206_v10 }
  0x1a   :  { %546 = vmatprep.subr.mxu0 %v611_v0 }
  0x1b   :  { %547 = vmatpush3.msra.mxu0 %v205_v16 }
  0x1c   :  { %548 = vmatprep.subr.mxu0 %v611_v0 }
  0x1d   :  { %549 = vmatpush3.msra.mxu0 %v204_v17 }
  0x1e   :  { %550 = vmatprep.subr.mxu0 %v611_v0 }
  0x1f   :  { %551 = vmatpush3.msra.mxu0 %v203_v18 }
  0x20   :  { %566 = vmatprep.subr.mxu0 %v611_v0 }
  0xd7   :  { %v110_v12 = vpop.f32.mrf.mxu0 }
  0xd8   :  { %v111_v13 = vadd.f32 %v483_v11, %v110_v12 }
  0xd9   :  { %v532_v14 = vpop.f32.mrf.mxu0 }
  0xda   :  { %v114_v15 = vmax.f32 %v111_v13, 0.0 }
  0xdc   :  { %542 = vmatmul.mubr.msk.f32.vlgmr.msra.gmra.mxu1 %vm40_vm1, %v114_v15 }
  0xdd   :  { %563 = vmatprep.mubr.msk.f32.mxu1 %vm612_vm0, %v611_v0  ;;  %556 = vmatpush3.msra.mxu1 %v293_v19 }
  0xde   :  { %557 = vmatprep.subr.mxu1 %v611_v0 }
  0xdf   :  { %558 = vmatpush3.msra.mxu1 %v292_v25 }
  0xe0   :  { %559 = vmatprep.subr.mxu1 %v611_v0 }
  0xe1   :  { %560 = vmatpush3.msra.mxu1 %v291_v26 }
  0xe2   :  { %561 = vmatprep.subr.mxu1 %v611_v0 }
  0xe3   :  { %562 = vmatpush3.msra.mxu1 %v290_v27 }
 0x19c   :  { %v197_v21 = vpop.f32.mrf.mxu1 }
 0x19d   :  { %v198_v22 = vadd.f32 %v486_v20, %v197_v21 }
 0x19e   :  { %v543_v23 = vpop.f32.mrf.mxu1 }
 0x19f   :  { %v201_v24 = vmax.f32 %v198_v22, 0.0 }
 0x1a1   :  { %553 = vmatmul.mubr.msk.f32.vlgmr.msra.gmra.mxu0 %vm40_vm1, %v201_v24 }
 0x1a2   :  { %574 = vmatprep.mubr.msk.f32.mxu0 %vm612_vm0, %v611_v0  ;;  %567 = vmatpush3.msra.mxu0 %v380_v28 }
 0x1a3   :  { %568 = vmatprep.subr.mxu0 %v611_v0 }
 0x1a4   :  { %569 = vmatpush3.msra.mxu0 %v379_v34 }
 0x1a5   :  { %570 = vmatprep.subr.mxu0 %v611_v0 }
 0x1a6   :  { %571 = vmatpush3.msra.mxu0 %v378_v35 }
 0x1a7   :  { %572 = vmatprep.subr.mxu0 %v611_v0 }
 0x1a8   :  { %573 = vmatpush3.msra.mxu0 %v377_v36 }
 0x261   :  { %v284_v30 = vpop.f32.mrf.mxu0 }
 0x262   :  { %v285_v31 = vadd.f32 %v489_v29, %v284_v30 }
 0x263   :  { %v554_v32 = vpop.f32.mrf.mxu0 }
 0x264   :  { %v288_v33 = vmax.f32 %v285_v31, 0.0 }
 0x266   :  { %564 = vmatmul.mubr.msk.f32.vlgmr.msra.gmra.mxu1 %vm40_vm1, %v288_v33 }
 0x326   :  { %v371_v38 = vpop.f32.mrf.mxu1 }
 0x327   :  { %v372_v39 = vadd.f32 %v492_v37, %v371_v38 }
 0x328   :  { %v565_v40 = vpop.f32.mrf.mxu1 }
 0x329   :  { %v375_v41 = vmax.f32 %v372_v39, 0.0 }
 0x32b   :  { %575 = vmatmul.mubr.msk.f32.vlgmr.msra.gmra.mxu0 %vm40_vm1, %v375_v41 }
 0x3eb   :  { %v458_v45 = vpop.f32.mrf.mxu0 }
 0x3ec   :  { %v459_v46 = vadd.f32 %v495_v44, %v458_v45 }
 0x3ed   :  { %v576_v47 = vpop.f32.mrf.mxu0 }
 0x3ee   :  { %v465_v48 = vsel %vm464_vm2, %v459_v46, -inf }
 0x3ef   :  { %v466_v49 = vsel %vm40_vm1, %v465_v48, -inf }
 0x3f0   :  { %467 = vmax.xlane.f32.xlu0 %v466_v49 }
 0x479   :  { %v468_v50 = vpop.xlane.xlu0 %467 }
 0x47a   :  { %v469_v51 = vsub.f32 %v465_v48, %v468_v50 }
 0x47c   :  { %v470_v52 = vmul.f32 1.442695, %v469_v51 }
 0x47e   :  { %582 = vpow2.f32 %v470_v52 }
 0x48b   :  { %v583_v53 = vpop.eup %582 }
 0x48c   :  { %v472_v54 = vsel %vm40_vm1, %v583_v53, 0.0 }
 0x48d   :  { %473 = vadd.xlane.f32.xlu0 %v472_v54 }
 0x516   :  { %v474_v55 = vpop.xlane.xlu0 %473 }
 0x517   :  { %584 = vrcp.f32 %v474_v55 }
 0x524   :  { %v585_v56 = vpop.eup %584 }
 0x525   :  { %v476_v57 = vmul.f32 %v585_v56, %v583_v53 }
 0x527   :  { %477 = vst.msk [vmem:[%s698_s3] sm:$0xff] %vm40_vm1, %v476_v57 }
 0x528   :  { %482 = vsyncpa [#allocation3], 1 }

</bundles_post_ra>
